<compile_context>
chip_gen: v5e
topology: v5e:2x2
jax: 0.10.0
libtpu: 0.0.40
codegen_flags: <defaults>
</compile_context>

<pallas_src>
import functools

import jax
import jax.numpy as jnp
from jax.experimental import pallas as pl
from jax.experimental.pallas import tpu as pltpu


def _round_up(x, m):
    return (x + m - 1) // m * m


def _cdiv(a, b):
    return (a + b - 1) // b


def _sublane(dtype):
    # Sublane packing: 8 rows for 32-bit, 16 for bf16, 32 for int8/fp8.
    return max(8, 32 // jnp.dtype(dtype).itemsize)


def _vmem_budgets():
    """(tile-picker budget, vmem_limit_bytes), generation-aware."""
    try:
        cap = int(pltpu.get_tpu_info().vmem_capacity_bytes)
        cap = min(cap, 128 * 1024 * 1024)
    except Exception:
        cap = 64 * 1024 * 1024  # conservative fallback (v7x per-TensorCore size)
    budget = max(16 * 1024 * 1024, int(cap * 0.45))
    limit = max(budget + 8 * 1024 * 1024, int(cap * 0.75))
    return budget, limit


# ---------------------------------------------------------------------------
# Kernels
# ---------------------------------------------------------------------------
def _cp_kernel_fused(z_ref, u_ref, cw_ref, cb_ref, out_ref, *, degree, k_pad):
    """Fused path: one matmul for all degrees (weights fully resident).

    z_ref  : (tm, d_pad)              row tile (native dtype, ones column appended)
    u_ref  : (d_pad, degree * k_pad)  all U_i fused; +1 row folded in for i >= 2
    cw_ref : (k_pad, o_pad)           layer_C weight (transposed, padded)
    cb_ref : (1, o_pad)               layer_C bias (f32, padded)
    out_ref: (tm, o_pad)
    """
    z = z_ref[...]                                         # native dtype to the MXU
    p = jnp.dot(z, u_ref[...], preferred_element_type=jnp.float32)

    # out = U1(z); out *= (U_i(z) + 1)  — lane-aligned static slices.
    out = p[:, :k_pad]
    for i in range(1, degree):
        out = out * p[:, i * k_pad:(i + 1) * k_pad]

    # layer_C: cast LHS back to weight dtype (native bf16 MXU pass when applicable).
    x = jnp.dot(out.astype(cw_ref.dtype), cw_ref[...],
                preferred_element_type=jnp.float32)
    out_ref[...] = (x + cb_ref[...]).astype(out_ref.dtype)


def _cp_kernel_stream(z_ref, u_ref, cw_ref, cb_ref, out_ref, acc_ref):
    """Streaming path: degree on an 'arbitrary' grid axis, U_i streamed per step.

    z_ref  : (tm, d_pad)      (revisited across the degree axis)
    u_ref  : (d_pad, k_pad)   U_j for the current degree step (+1 row folded, j >= 1)
    cw_ref : (k_pad, o_pad)
    cb_ref : (1, o_pad)       f32
    out_ref: (tm, o_pad)
    acc_ref: (tm, k_pad) f32  running Hadamard product
    """
    j = pl.program_id(1)
    p = jnp.dot(z_ref[...], u_ref[...], preferred_element_type=jnp.float32)

    @pl.when(j == 0)
    def _():
        acc_ref[...] = p

    @pl.when(j > 0)
    def _():
        acc_ref[...] = acc_ref[...] * p

    @pl.when(j == pl.num_programs(1) - 1)
    def _():
        x = jnp.dot(acc_ref[...].astype(cw_ref.dtype), cw_ref[...],
                    preferred_element_type=jnp.float32)
        out_ref[...] = (x + cb_ref[...]).astype(out_ref.dtype)


# ---------------------------------------------------------------------------
# Tile pickers
# ---------------------------------------------------------------------------
def _pick_tm_fused(d_pad, k_pad, o_pad, degree, in_isz, w_isz, budget):
    kt = degree * k_pad
    fixed = w_isz * (d_pad * kt + k_pad * o_pad) + 4 * o_pad          # single-buffered
    per_row = 2 * in_isz * (d_pad + o_pad) + 4 * (kt + k_pad + o_pad)  # tiles + f32 temps
    tm = 512
    while tm > 8 and fixed + tm * per_row > budget:
        tm //= 2
    return max(8, tm)


def _pick_tm_stream(d_pad, k_pad, o_pad, in_isz, w_isz, budget):
    fixed = 2 * w_isz * d_pad * k_pad + w_isz * k_pad * o_pad + 4 * o_pad
    per_row = 2 * in_isz * (d_pad + o_pad) + 4 * (2 * k_pad + o_pad)
    tm = 512
    while tm > 8 and fixed + tm * per_row > budget:
        tm //= 2
    return max(8, tm)


# ---------------------------------------------------------------------------
# Wrapper
# ---------------------------------------------------------------------------
def cp_forward(z, u_weights, c_weight, c_bias, *, tm=None, lane=128,
               force_stream=False):
    """Pallas CP forward.

    z         : (..., d)
    u_weights : (degree, k, d)   -- PyTorch nn.Linear weight layout per U_i
    c_weight  : (o, k)           -- PyTorch nn.Linear weight layout
    c_bias    : (o,)
    returns   : (..., o)
    """
    degree, k, d = u_weights.shape
    o = c_weight.shape[0]

    original_shape = z.shape[:-1]
    z2 = z.reshape(-1, d)
    n = z2.shape[0]

    in_dt, w_dt = z.dtype, u_weights.dtype
    in_isz = jnp.dtype(in_dt).itemsize
    w_isz = jnp.dtype(w_dt).itemsize
    sl = max(_sublane(in_dt), _sublane(w_dt))

    k_pad = _round_up(k, lane)
    o_pad = _round_up(o, lane)
    d_aug = d + (1 if degree > 1 else 0)     # ones column folds "+ out" into the matmul
    d_pad = _round_up(d_aug, sl)

    budget, vmem_limit = _vmem_budgets()

    fused_weight_bytes = w_isz * (d_pad * degree * k_pad + k_pad * o_pad) + 4 * o_pad
    use_stream = force_stream or fused_weight_bytes > budget // 2

    if use_stream:
        stream_fixed = 2 * w_isz * d_pad * k_pad + w_isz * k_pad * o_pad + 4 * o_pad
        if stream_fixed > budget:
            # TODO(synk): add a k_pad-split streaming path for ranks this large.
            raise ValueError(
                f"CP weights need ~{stream_fixed} resident bytes, exceeding the VMEM "
                f"budget of {budget} bytes even with degree streaming.")

    if tm is None:
        if use_stream:
            tm = _pick_tm_stream(d_pad, k_pad, o_pad, in_isz, w_isz, budget)
        else:
            tm = _pick_tm_fused(d_pad, k_pad, o_pad, degree, in_isz, w_isz, budget)

    # Clamp to the (sublane-aligned) row count.
    tm = max(sl, min(int(tm), _round_up(n, sl)))
    if n > 256:
        # Bound zero-row padding waste and keep >= 2 grid steps (v7x has 2 TCs).
        n_steps = max(2, _cdiv(n, tm))
        tm_bal = _round_up(_cdiv(n, n_steps), sl)
        tm_128 = _round_up(tm_bal, 128)
        if _round_up(n, tm_128) <= max(n + sl, int(1.1 * n)):
            tm = min(tm, tm_128)          # MXU-friendly 128-multiple, little waste
        else:
            tm = min(tm, tm_bal)          # minimize padded rows
    tm = _round_up(tm, sl)
    n_pad = _round_up(n, tm)

    # ---- weight / input prep (plain JAX glue, zero-padded for lane density) ----
    u_t = jnp.transpose(u_weights, (0, 2, 1))                        # (degree, d, k)
    u_t = jnp.pad(u_t, ((0, 0), (0, d_pad - d), (0, k_pad - k)))     # (degree, d_pad, k_pad)
    if degree > 1:
        # Row `d` pairs with the ones column of z: adds +1 to every degree >= 2 so
        # the chain "U_i(z)*out + out" becomes "(U_i(z)+1) * out".
        u_t = u_t.at[1:, d, :k].set(jnp.asarray(1, u_t.dtype))
    u_all = jnp.transpose(u_t, (1, 0, 2)).reshape(d_pad, degree * k_pad)

    cw = jnp.pad(c_weight.T, ((0, k_pad - k), (0, o_pad - o)))       # (k_pad, o_pad)
    cb = jnp.pad(c_bias.astype(jnp.float32), (0, o_pad - o)).reshape(1, o_pad)

    z_p = jnp.zeros((n_pad, d_pad), in_dt)
    z_p = z_p.at[:n, :d].set(z2)
    if degree > 1:
        z_p = z_p.at[:n, d].set(jnp.asarray(1, in_dt))

    if not use_stream:
        kernel = functools.partial(_cp_kernel_fused, degree=degree, k_pad=k_pad)
        out = pl.pallas_call(
            kernel,
            out_shape=jax.ShapeDtypeStruct((n_pad, o_pad), in_dt),
            grid_spec=pltpu.PrefetchScalarGridSpec(
                num_scalar_prefetch=0,
                grid=(n_pad // tm,),
                in_specs=[
                    pl.BlockSpec((tm, d_pad), lambda i: (i, 0)),       # z rows
                    pl.BlockSpec((d_pad, degree * k_pad), lambda i: (0, 0),
                                 pipeline_mode=pl.Buffered(1)),        # fused U (invariant)
                    pl.BlockSpec((k_pad, o_pad), lambda i: (0, 0),
                                 pipeline_mode=pl.Buffered(1)),        # C weight (invariant)
                    pl.BlockSpec((1, o_pad), lambda i: (0, 0),
                                 pipeline_mode=pl.Buffered(1)),        # C bias (invariant)
                ],
                out_specs=pl.BlockSpec((tm, o_pad), lambda i: (i, 0)),
            ),
            compiler_params=pltpu.CompilerParams(
                dimension_semantics=("parallel",),
                vmem_limit_bytes=vmem_limit),
        )(z_p, u_all, cw, cb)
    else:
        out = pl.pallas_call(
            _cp_kernel_stream,
            out_shape=jax.ShapeDtypeStruct((n_pad, o_pad), in_dt),
            grid_spec=pltpu.PrefetchScalarGridSpec(
                num_scalar_prefetch=0,
                grid=(n_pad // tm, degree),
                in_specs=[
                    pl.BlockSpec((tm, d_pad), lambda i, j: (i, 0)),    # z rows (revisited)
                    pl.BlockSpec((d_pad, k_pad), lambda i, j: (0, j)), # U_j streams
                    pl.BlockSpec((k_pad, o_pad), lambda i, j: (0, 0),
                                 pipeline_mode=pl.Buffered(1)),
                    pl.BlockSpec((1, o_pad), lambda i, j: (0, 0),
                                 pipeline_mode=pl.Buffered(1)),
                ],
                out_specs=pl.BlockSpec((tm, o_pad), lambda i, j: (i, 0)),
                scratch_shapes=[pltpu.VMEM((tm, k_pad), jnp.float32)],
            ),
            compiler_params=pltpu.CompilerParams(
                dimension_semantics=("parallel", "arbitrary"),
                vmem_limit_bytes=vmem_limit),
        )(z_p, u_all, cw, cb)

    return out[:n, :o].reshape(*original_shape, o)


def cp_reference(z, u_weights, c_weight, c_bias):
    """Pure-JAX reference matching the PyTorch forward exactly."""
    degree, k, d = u_weights.shape
    original_shape = z.shape[:-1]
    z2 = z.reshape(-1, d).astype(jnp.float32)
    out = z2 @ u_weights[0].astype(jnp.float32).T
    for i in range(1, degree):
        out = (z2 @ u_weights[i].astype(jnp.float32).T) * out + out
    x = out @ c_weight.astype(jnp.float32).T + c_bias.astype(jnp.float32)
    return x.reshape(*original_shape, c_weight.shape[0]).astype(z.dtype)


if __name__ == "__main__":
    # Small, CP-forward-consistent shapes: z is (batch, seq, d).
    degree, d, k, o = 3, 32, 32, 16
    batch, seq = 2, 8

    key = jax.random.PRNGKey(0)
    kz, ku, kcw, kcb = jax.random.split(key, 4)

    z = jax.random.normal(kz, (batch, seq, d), dtype=jnp.float32)

    # Deterministic parameter init (uniform, kaiming-like scale); PyTorch layout:
    #   U_i.weight : (k, d), layer_C.weight : (o, k), layer_C.bias : (o,)
    u_weights = jax.random.uniform(ku, (degree, k, d), dtype=jnp.float32,
                                   minval=-1.0, maxval=1.0) / (d ** 0.5)
    c_weight = jax.random.uniform(kcw, (o, k), dtype=jnp.float32,
                                  minval=-1.0, maxval=1.0) / (k ** 0.5)
    c_bias = jax.random.uniform(kcb, (o,), dtype=jnp.float32,
                                minval=-1.0, maxval=1.0) / (k ** 0.5)

    ref = cp_reference(z, u_weights, c_weight, c_bias)

    # Fused (resident-weight) path.
    out = jax.block_until_ready(cp_forward(z, u_weights, c_weight, c_bias))
    assert out.shape == (batch, seq, o)
    assert jnp.allclose(out, ref, atol=1e-4, rtol=1e-4), "fused path mismatch"

    # Degree-streaming path (taken automatically when weights exceed the VMEM budget).
    out_s = jax.block_until_ready(
        cp_forward(z, u_weights, c_weight, c_bias, force_stream=True))
    assert jnp.allclose(out_s, ref, atol=1e-4, rtol=1e-4), "stream path mismatch"

    # Non-tile-multiple row count exercises the tile clamp / multi-step grid.
    z_big = jax.random.normal(kz, (5, 64, d), dtype=jnp.float32)   # n = 320 rows
    out_b = jax.block_until_ready(cp_forward(z_big, u_weights, c_weight, c_bias))
    ref_b = cp_reference(z_big, u_weights, c_weight, c_bias)
    assert jnp.allclose(out_b, ref_b, atol=1e-4, rtol=1e-4), "multi-tile mismatch"

    print("KERNEL_OK")
</pallas_src>

<mosaic_0001>
module attributes {stable_mosaic.version = 11 : i64} {
  func.func @_cp_kernel_fused(%arg0: i32, %arg1: memref<16x40xf32, #tpu.memory_space<vmem>>, %arg2: memref<40x384xf32, #tpu.memory_space<vmem>>, %arg3: memref<128x128xf32, #tpu.memory_space<vmem>>, %arg4: memref<1x128xf32, #tpu.memory_space<vmem>>, %arg5: memref<16x128xf32, #tpu.memory_space<vmem>>) attributes {dimension_semantics = [#tpu.dimension_semantics<parallel>], iteration_bounds = array<i64: 1>, scalar_prefetch = 0 : i64, scratch_operands = 0 : i64, tpu.core_type = #tpu.core_type<tc>, window_params = [{transform_indices = @transform_0, window_bounds = array<i64: 16, 40>}, {pipeline_mode = #tpu.pipeline_mode<synchronous>, transform_indices = @transform_1, window_bounds = array<i64: 40, 384>}, {pipeline_mode = #tpu.pipeline_mode<synchronous>, transform_indices = @transform_2, window_bounds = array<i64: 128, 128>}, {pipeline_mode = #tpu.pipeline_mode<synchronous>, transform_indices = @transform_3, window_bounds = array<i64: 1, 128>}, {transform_indices = @transform_4, window_bounds = array<i64: 16, 128>}]} {
    %c0 = arith.constant 0 : index
    %c0_0 = arith.constant 0 : index
    %0 = vector.load %arg1[%c0, %c0_0] : memref<16x40xf32, #tpu.memory_space<vmem>>, vector<16x40xf32>
    %c0_1 = arith.constant 0 : index
    %c0_2 = arith.constant 0 : index
    %1 = vector.load %arg2[%c0_1, %c0_2] : memref<40x384xf32, #tpu.memory_space<vmem>>, vector<40x384xf32>
    %cst = arith.constant dense<0.000000e+00> : vector<16x384xf32>
    %2 = tpu.matmul %0, %1, %cst {dimension_numbers = #tpu.dot_dimension_numbers<[1], [0], [0], [1], [0, 0, 1, 1], [], []>} : vector<16x40xf32>, vector<40x384xf32>, vector<16x384xf32> -> vector<16x384xf32>
    %3 = vector.extract_strided_slice %2 {offsets = [0, 0], sizes = [16, 128], strides = [1, 1]} : vector<16x384xf32> to vector<16x128xf32>
    %4 = vector.extract_strided_slice %2 {offsets = [0, 128], sizes = [16, 128], strides = [1, 1]} : vector<16x384xf32> to vector<16x128xf32>
    %5 = arith.mulf %3, %4 : vector<16x128xf32>
    %6 = vector.extract_strided_slice %2 {offsets = [0, 256], sizes = [16, 128], strides = [1, 1]} : vector<16x384xf32> to vector<16x128xf32>
    %7 = arith.mulf %5, %6 : vector<16x128xf32>
    %c0_3 = arith.constant 0 : index
    %c0_4 = arith.constant 0 : index
    %8 = vector.load %arg3[%c0_3, %c0_4] : memref<128x128xf32, #tpu.memory_space<vmem>>, vector<128x128xf32>
    %cst_5 = arith.constant dense<0.000000e+00> : vector<16x128xf32>
    %9 = tpu.matmul %7, %8, %cst_5 {dimension_numbers = #tpu.dot_dimension_numbers<[1], [0], [0], [1], [0, 0, 1, 1], [], []>} : vector<16x128xf32>, vector<128x128xf32>, vector<16x128xf32> -> vector<16x128xf32>
    %c0_6 = arith.constant 0 : index
    %c0_7 = arith.constant 0 : index
    %10 = vector.load %arg4[%c0_6, %c0_7] : memref<1x128xf32, #tpu.memory_space<vmem>>, vector<1x128xf32>
    %11 = vector.broadcast %10 : vector<1x128xf32> to vector<16x128xf32>
    %12 = arith.addf %9, %11 : vector<16x128xf32>
    %c0_8 = arith.constant 0 : index
    %c0_9 = arith.constant 0 : index
    %13 = vector.load %arg5[%c0_8, %c0_9] : memref<16x128xf32, #tpu.memory_space<vmem>>, vector<16x128xf32>
    tpu.vector_store %arg5[%c0_8, %c0_9], %12 {strides = array<i32>} : memref<16x128xf32, #tpu.memory_space<vmem>>, vector<16x128xf32>,
    return
  }
  func.func @transform_0(%arg0: i32) -> (i32, i32) {
    %c0_i32 = arith.constant 0 : i32
    %c0_i32_0 = arith.constant 0 : i32
    return %arg0, %c0_i32 : i32, i32
  }
  func.func @transform_1(%arg0: i32) -> (i32, i32) {
    %c0_i32 = arith.constant 0 : i32
    %c0_i32_0 = arith.constant 0 : i32
    %c0_i32_1 = arith.constant 0 : i32
    return %c0_i32, %c0_i32_0 : i32, i32
  }
  func.func @transform_2(%arg0: i32) -> (i32, i32) {
    %c0_i32 = arith.constant 0 : i32
    %c0_i32_0 = arith.constant 0 : i32
    %c0_i32_1 = arith.constant 0 : i32
    return %c0_i32, %c0_i32_0 : i32, i32
  }
  func.func @transform_3(%arg0: i32) -> (i32, i32) {
    %c0_i32 = arith.constant 0 : i32
    %c0_i32_0 = arith.constant 0 : i32
    %c0_i32_1 = arith.constant 0 : i32
    return %c0_i32, %c0_i32_0 : i32, i32
  }
  func.func @transform_4(%arg0: i32) -> (i32, i32) {
    %c0_i32 = arith.constant 0 : i32
    %c0_i32_0 = arith.constant 0 : i32
    return %arg0, %c0_i32 : i32, i32
  }
}

</mosaic_0001>

<bundles_post_ra>
// kernel: tpu_custom_call.1
= control target key start
LH: loop header
LB: loop body
LE: loop exit
PB: predicated region body
PF: predicated region fallthrough
CT: control target
= control target key end

     0   :  { %9 = vsyncpa [#allocation3], 0  ;;  %s407_s0 = inlined_call_operand.hbm [shape: f32[16,40], index: 0, kind: input, shape index: {}]   ;;  %s408_s1 = inlined_call_operand.hbm [shape: f32[40,384], index: 1, kind: input, shape index: {}]   ;;  %s409_s2 = inlined_call_operand.hbm [shape: f32[128,128], index: 2, kind: input, shape index: {}]   ;;  %s410_s3 = inlined_call_operand.vmem [shape: f32[1,128], index: 3, kind: input, shape index: {}]   ;;  %s411_s4 = inlined_call_operand.hbm [shape: f32[16,128], index: 4, kind: output, shape index: {}]  }
   0x1   :  { %10 = vsyncpa [#allocation6], 0  ;;  %s29_s17 = sshll.u32 %s408_s1, 4  ;;  %s30_s17 = int_to_ptr.hbm [resolvable:$true] %s29_s17 }
   0x2   :  { %11 = vsyncpa [#allocation4], 0  ;;  %s344_s18 = smov [#allocation5]   ;;  %s16_s22 = sshll.u32 %s407_s0, 4  ;;  %s17_s22 = int_to_ptr.hbm [resolvable:$true] %s16_s22 }
   0x3   :  { %s31_s19 = sshll.u32 %s344_s18, 4  ;;  %s345_s23 = smov 384   ;;  %s32_s19 = int_to_ptr.vmem [resolvable:$true] %s31_s19 }
   0x4   :  { %s346_s24 = smov 24   ;;  %s347_s25 = smov [#allocation2]  }
   0x5   :  { %37 = dma.hbm_to_vmem [thread:$0]  %s30_s17, 1920, %s32_s19, [#allocation6], %s345_s23, %s345_s23, %s346_s24  }
   0x6   :  { %s18_s26 = sshll.u32 %s347_s25, 4  ;;  %s348_s27 = smov 128   ;;  %s19_s26 = int_to_ptr.vmem [resolvable:$true] %s18_s26 }
   0x7   :  { %s349_s28 = smov 8   ;;  %s42_s30 = sshll.u32 %s409_s2, 4  ;;  %s43_s30 = int_to_ptr.hbm [resolvable:$true] %s42_s30 }
   0x8   :  { %24 = dma.hbm_to_vmem [thread:$0]  %s17_s22, 256, %s19_s26, [#allocation3], %s348_s27, %s348_s27, %s349_s28  }
   0x9   :  { %s350_s5 = smov [#allocation7]  }
   0xa   :  { %s44_s0 = sshll.u32 %s350_s5, 4  ;;  %s45_s0 = int_to_ptr.vmem [resolvable:$true] %s44_s0 }
   0xb   :  { %50 = dma.hbm_to_vmem [thread:$0]  %s43_s30, 2048, %s45_s0, [#allocation6], %s348_s27, %s348_s27, %s349_s28  }
   0xc   :  { %338 = dma.done.wait [#allocation3], 256  }
   0xd   :  { %339 = vsyncadd [#allocation3], 4294967040 }
   0xe   :  { %340 = dma.done.wait [#allocation6], 3968  }
   0xf   :  { %341 = vsyncadd [#allocation6], 4294963328  ;;  %v81_v0 = vld [vmem:[#allocation5 + $0x70] sm:$0xff]  ;;  %v78_v1 = vld [vmem:[#allocation5 + $0x58] sm:$0xff]  ;;  %vm82_vm0 = vcmask 326656   ;;  %s351_s7 = smov [#allocation8]  }
  0x10   :  { %v79_v2 = vld [vmem:[#allocation5 + $0x60] sm:$0xff]  ;;  %146 = vmatpush.msra.mxu2 %v81_v0  ;;  %v80_v3 = vld [vmem:[#allocation5 + $0x68] sm:$0xff]  ;;  %v77_v6 = vld [vmem:[#allocation5 + $0x50] sm:$0xff]  ;;  %s211_s8 = sshll.u32 %s351_s7, 4  ;;  %s213_s11 = sshll.u32 %s411_s4, 4  ;;  %s212_s8 = int_to_ptr.vmem [resolvable:$true] %s211_s8  ;;  %s214_s11 = int_to_ptr.hbm [resolvable:$true] %s213_s11 }
  0x11   :  { %100 = vmatpush.msra.mxu0 %v79_v2  ;;  %v76_v4 = vld [vmem:[#allocation5 + $0x48] sm:$0xff]  ;;  %123 = vmatpush.msra.mxu1 %v80_v3  ;;  %v75_v5 = vld [vmem:[#allocation5 + $0x40] sm:$0xff]  ;;  %v73_v7 = vld [vmem:[#allocation5 + $0x30] sm:$0xff] }
  0x12   :  { %147 = vmatpush.msra.mxu2 %v78_v1  ;;  %v74_v8 = vld [vmem:[#allocation5 + $0x38] sm:$0xff]  ;;  %v72_v9 = vld [vmem:[#allocation5 + $0x28] sm:$0xff]  ;;  %v71_v11 = vld [vmem:[#allocation5 + $0x20] sm:$0xff] }
  0x13   :  { %101 = vmatpush.msra.mxu0 %v76_v4  ;;  %124 = vmatpush.msra.mxu1 %v77_v6  ;;  %v70_v10 = vld [vmem:[#allocation5 + $0x18] sm:$0xff]  ;;  %v177_v12 = vld [vmem:[#allocation7 + $0x78] sm:$0xff]  ;;  %v67_v14 = vld [vmem:[#allocation5] sm:$0xff] }
  0x14   :  { %148 = vmatpush.msra.mxu2 %v75_v5  ;;  %v69_v13 = vld [vmem:[#allocation5 + $0x10] sm:$0xff]  ;;  %182 = vmatpush.msra.mxu3 %v177_v12  ;;  %v176_v15 = vld [vmem:[#allocation7 + $0x70] sm:$0xff]  ;;  %v175_v18 = vld [vmem:[#allocation7 + $0x68] sm:$0xff] }
  0x15   :  { %102 = vmatpush.msra.mxu0 %v73_v7  ;;  %125 = vmatpush.msra.mxu1 %v74_v8  ;;  %v65_v16 = vld [vmem:[#allocation2] sm:$0xff]  ;;  %v68_v17 = vld [vmem:[#allocation5 + $0x8] sm:$0xff]  ;;  %v174_v19 = vld [vmem:[#allocation7 + $0x60] sm:$0xff] }
  0x16   :  { %149 = vmatpush.msra.mxu2 %v72_v9  ;;  %183 = vmatpush.msra.mxu3 %v176_v15  ;;  %v173_v20 = vld [vmem:[#allocation7 + $0x58] sm:$0xff]  ;;  %v66_v21 = vld [vmem:[#allocation2 + $0x8] sm:$0xff]  ;;  %v172_v22 = vld [vmem:[#allocation7 + $0x50] sm:$0xff] }
  0x17   :  { %103 = vmatpush.msra.mxu0 %v70_v10  ;;  %126 = vmatpush.msra.mxu1 %v71_v11  ;;  %v171_v23 = vld [vmem:[#allocation7 + $0x48] sm:$0xff]  ;;  %v170_v24 = vld [vmem:[#allocation7 + $0x40] sm:$0xff]  ;;  %v169_v25 = vld [vmem:[#allocation7 + $0x38] sm:$0xff] }
  0x18   :  { %150 = vmatpush.msra.mxu2 %v69_v13  ;;  %184 = vmatpush.msra.mxu3 %v175_v18  ;;  %v168_v26 = vld [vmem:[#allocation7 + $0x30] sm:$0xff]  ;;  %v167_v27 = vld [vmem:[#allocation7 + $0x28] sm:$0xff]  ;;  %v166_v28 = vld [vmem:[#allocation7 + $0x20] sm:$0xff] }
  0x19   :  { %104 = vmatpush.msra.mxu0 %v67_v14  ;;  %231 = vmatmul.msk.f32.vlgmr.msra.gmra.mxu2 %vm82_vm0, %v65_v16  ;;  %v165_v29 = vld [vmem:[#allocation7 + $0x18] sm:$0xff]  ;;  %v164_v30 = vld [vmem:[#allocation7 + $0x10] sm:$0xff]  ;;  %v163_v31 = vld [vmem:[#allocation7 + $0x8] sm:$0xff] }
  0x1a   :  { %127 = vmatpush.msra.mxu1 %v68_v17  ;;  %227 = vmatmul.msk.f32.vlgmr.msra.gmra.mxu0 %vm82_vm0, %v65_v16  ;;  %v162_v32 = vld [vmem:[#allocation7] sm:$0xff]  ;;  %v241_v43 = vld [vmem:[%s410_s3] ss:$0 sm:$0xff] }
  0x1b   :  { %229 = vmatmul.msk.f32.vlgmr.msra.gmra.mxu1 %vm82_vm0, %v65_v16  ;;  %185 = vmatpush.msra.mxu3 %v174_v19 }
  0x1d   :  { %186 = vmatpush.msra.mxu3 %v173_v20 }
  0x1f   :  { %187 = vmatpush.msra.mxu3 %v172_v22 }
  0x21   :  { %232 = vmatmul.msk.f32.gmra.mxu2 %vm82_vm0, %v66_v21  ;;  %188 = vmatpush.msra.mxu3 %v171_v23 }
  0x22   :  { %228 = vmatmul.msk.f32.gmra.mxu0 %vm82_vm0, %v66_v21 }
  0x23   :  { %230 = vmatmul.msk.f32.gmra.mxu1 %vm82_vm0, %v66_v21  ;;  %189 = vmatpush.msra.mxu3 %v170_v24 }
  0x25   :  { %190 = vmatpush.msra.mxu3 %v169_v25 }
  0x27   :  { %191 = vmatpush.msra.mxu3 %v168_v26 }
  0x29   :  { %192 = vmatpush.msra.mxu3 %v167_v27 }
  0x2b   :  { %193 = vmatpush.msra.mxu3 %v166_v28 }
  0x2d   :  { %194 = vmatpush.msra.mxu3 %v165_v29 }
  0x2f   :  { %195 = vmatpush.msra.mxu3 %v164_v30 }
  0x31   :  { %196 = vmatpush.msra.mxu3 %v163_v31 }
  0x33   :  { %197 = vmatpush.msra.mxu3 %v162_v32 }
  0x97   :  { %v106_v33 = vpop.f32.mrf.mxu0 }
  0x98   :  { %v129_v34 = vpop.f32.mrf.mxu1 }
  0x99   :  { %v158_v35 = vmul.f32 %v129_v34, %v106_v33 }
  0x9c   :  { %v152_v36 = vpop.f32.mrf.mxu2 }
  0x9d   :  { %v160_v37 = vmul.f32 %v158_v35, %v152_v36 }
  0x9f   :  { %198 = vmatmul.f32.vlgmr.msra.gmra.mxu3 %v160_v37  ;;  %v109_v38 = vpop.f32.mrf.mxu0 }
  0xa0   :  { %v132_v39 = vpop.f32.mrf.mxu1 }
  0xa1   :  { %v159_v40 = vmul.f32 %v132_v39, %v109_v38 }
  0xa4   :  { %v155_v41 = vpop.f32.mrf.mxu2 }
  0xa5   :  { %v161_v42 = vmul.f32 %v159_v40, %v155_v41 }
  0xa7   :  { %201 = vmatmul.f32.gmra.mxu3 %v161_v42 }
 0x122   :  { %v199_v44 = vpop.f32.mrf.mxu3 }
 0x123   :  { %v200_v45 = vadd.f32 %v241_v43, %v199_v44 }
 0x125   :  { %205 = vst [vmem:[#allocation8] sm:$0xff] %v200_v45 }
 0x12a   :  { %v202_v46 = vpop.f32.mrf.mxu3 }
 0x12b   :  { %v203_v47 = vadd.f32 %v241_v43, %v202_v46 }
 0x12d   :  { %206 = vst [vmem:[#allocation8 + $0x8] sm:$0xff] %v203_v47 }
 0x12e   :  { %219 = dma.vmem_to_hbm [thread:$0]  %s212_s8, 256, %s214_s11, [#allocation4], %s348_s27, %s348_s27, %s349_s28  }
 0x12f   :  { %342 = dma.done.wait [#allocation4], 256  }
 0x130   :  { %343 = vsyncadd [#allocation4], 4294967040 }
 0x131   :  { %224 = vsyncpa [#allocation3], 1 }
 0x132   :  { %225 = vsyncpa [#allocation6], 1 }
 0x133   :  { %226 = vsyncpa [#allocation4], 1 }

</bundles_post_ra>
